<compile_context>
chip_gen: v7x
topology: tpu7x:2x2x1
jax: 0.10.0
libtpu: 0.0.40
codegen_flags: <defaults>
</compile_context>

<pallas_src>
import numpy as np
import jax
import jax.numpy as jnp
from jax.experimental import pallas as pl
from jax.experimental.pallas import tpu as pltpu

# ----------------------------- sizes -----------------------------------------
B = 1            # the torch module's find_index/compute_CAM assume batch == 1
CIN = 3
H = W = 16       # input image spatial size; img_size = (W, H) like the module
C = 32           # backbone feature channels
NUM_CLASSES = 8
KH = KW = 2      # conv kernel / stride (patchify conv)
h, w = H // KH, W // KW
HW = h * w                       # 64 spatial locations in the feature map
CIN_K = CIN * KH * KW            # 12
CIN_K_PAD = 16                   # sublane-friendly padded contraction dim
HW_OUT = H * W                   # 256 — lane-dense output width


# ----------------------------- fused Pallas kernel ----------------------------
def cam_fused_kernel(xpT_ref, wc_ref, fcw_ref, bfc_ref, lcomb_ref, out_ref):
  """conv(as matmul)+ReLU -> class scores -> resize(all) -> argmax-select -> norm -> u8."""
  # Backbone conv as matmul, transposed layout: featT[c, p] == feat[p, c].
  # Conv bias is folded into the matmul (xpT row 12 == 1, wc[:,12] == bias).
  featT = jnp.maximum(
      jnp.dot(wc_ref[...], xpT_ref[...], preferred_element_type=jnp.float32),
      0.0)                                                       # (C, HW)

  # Per-location class scores (bias-free: CAM must use bias-free scores).
  scoresT = jnp.dot(fcw_ref[...], featT,
                    preferred_element_type=jnp.float32)          # (NC, HW)

  # Hoisted resize: upsample ALL class CAM rows now so the MXU matmul does not
  # wait on the mean/argmax chain. Selection afterwards is a cheap VPU op.
  M = jnp.dot(scoresT, lcomb_ref[...],
              preferred_element_type=jnp.float32)                # (NC, H*W)

  # Logits: GAP commutes with fc, so logits = mean(scores, spatial) + fc bias.
  logits = jnp.mean(scoresT, axis=1, keepdims=True) + bfc_ref[...]   # (NC, 1)

  # argmax (first max) via iota/one-hot — no dynamic gather, no extra launch.
  lmax = jnp.max(logits)
  iota_col = jax.lax.broadcasted_iota(jnp.int32, (NUM_CLASSES, 1), 0)
  idx = jnp.min(jnp.where(logits == lmax, iota_col, NUM_CLASSES))
  onehot_col = (iota_col == idx).astype(jnp.float32)             # (NC, 1)

  # Select the chosen class' upsampled CAM row.
  up = jnp.sum(M * onehot_col, axis=0, keepdims=True)            # (1, H*W)

  # normalize_probmap: (cam - min) / max, then 1 - cam; scale to 255.
  up = up - jnp.min(up)
  inv = pl.reciprocal(jnp.maximum(jnp.max(up, keepdims=True), 1e-12),
                      approx=True)                               # EUP, ~free
  up = up * inv
  # clip guards the approx-reciprocal overshoot before truncating to uint8.
  out_ref[...] = jnp.clip(255.0 * (1.0 - up), 0.0, 255.0).astype(jnp.uint8)


# ----------------------------- glue helpers ----------------------------------
def _vmem_spec():
  # Whole array resident in VMEM, no grid, no pipelining bookkeeping.
  return pl.BlockSpec(memory_space=pltpu.MemorySpace.VMEM)


def bicubic_matrix(n_out, n_in, a=-0.75):
  """Row-stochastic bicubic interpolation matrix (cv2 INTER_CUBIC style)."""
  def k(t):
    t = abs(t)
    if t <= 1.0:
      return (a + 2.0) * t**3 - (a + 3.0) * t**2 + 1.0
    if t < 2.0:
      return a * t**3 - 5.0 * a * t**2 + 8.0 * a * t - 4.0 * a
    return 0.0
  L = np.zeros((n_out, n_in), dtype=np.float32)
  scale = n_in / n_out
  for i in range(n_out):
    x = (i + 0.5) * scale - 0.5
    x0 = int(np.floor(x))
    for m in range(-1, 3):
      src = min(max(x0 + m, 0), n_in - 1)       # border replicate
      L[i, src] += k(x - (x0 + m))
  return L


# Combined separable bicubic matrix: LCOMB[i*w+j, y*W+x] = LH[y,i] * LW[x,j].
_LH = bicubic_matrix(H, h)                       # (H, h)
_LW = bicubic_matrix(W, w)                       # (W, w)
LCOMB = jnp.asarray(
    np.einsum("yi,xj->ijyx", _LH, _LW).reshape(h * w, H * W).astype(np.float32))


def prepare_params(conv_w, conv_b, fc_w, fc_b):
  """One-time weight layout prep — hoisted off the per-frame call path."""
  wc = conv_w.reshape(C, CIN_K)
  # Fold conv bias into the (already required) contraction padding: col 12.
  wc = jnp.concatenate(
      [wc, conv_b.reshape(C, 1),
       jnp.zeros((C, CIN_K_PAD - CIN_K - 1), jnp.float32)], axis=1)  # (C, 16)
  bfc_col = fc_b.reshape(NUM_CLASSES, 1)
  return wc, fc_w, bfc_col


# ----------------------------- forward ---------------------------------------
@jax.jit
def visual_computer_forward(x, wc, fcw, bfc_col):
  """x: (1, 3, H, W) float32, prepared weights  ->  CAM: (H, W) uint8."""
  # im2col (transposed) for the stride-2, 2x2 conv; pure XLA layout glue on x.
  xr = x.reshape(B, CIN, h, KH, w, KW)
  xpT = jnp.transpose(xr, (1, 3, 5, 0, 2, 4)).reshape(CIN_K, HW)      # (12, 64)
  xpT = jnp.concatenate(
      [xpT,
       jnp.ones((1, HW), jnp.float32),                                # bias row
       jnp.zeros((CIN_K_PAD - CIN_K - 1, HW), jnp.float32)], axis=0)  # (16, 64)

  cam_row = pl.pallas_call(
      cam_fused_kernel,
      out_shape=jax.ShapeDtypeStruct((1, HW_OUT), jnp.uint8),
      in_specs=[_vmem_spec(),        # xpT            (16, 64)
                _vmem_spec(),        # conv weight+b  (32, 16)
                _vmem_spec(),        # fc weight      (8, 32)
                _vmem_spec(),        # fc bias        (8, 1)
                _vmem_spec()],       # bicubic matrix (64, 256)
      out_specs=_vmem_spec(),
  )(xpT, wc, fcw, bfc_col, LCOMB)

  return cam_row.reshape(H, W)       # free view; dtype already uint8


# ----------------------------- main ------------------------------------------
if __name__ == "__main__":
  key = jax.random.PRNGKey(0)
  kx, kcw, kcb, kfw, kfb = jax.random.split(key, 5)
  x = jax.random.normal(kx, (B, CIN, H, W), dtype=jnp.float32)
  conv_w = 0.1 * jax.random.normal(kcw, (C, CIN, KH, KW), dtype=jnp.float32)
  conv_b = 0.1 * jax.random.normal(kcb, (C,), dtype=jnp.float32)
  fc_w = 0.1 * jax.random.normal(kfw, (NUM_CLASSES, C), dtype=jnp.float32)
  fc_b = 0.1 * jax.random.normal(kfb, (NUM_CLASSES,), dtype=jnp.float32)

  # One-time weight prep (outside the per-call jitted path).
  wc, fcw, bfc_col = prepare_params(conv_w, conv_b, fc_w, fc_b)

  cam = visual_computer_forward(x, wc, fcw, bfc_col)
  cam = jax.block_until_ready(cam)

  assert cam.shape == (H, W), cam.shape
  assert cam.dtype == jnp.uint8, cam.dtype
  assert int(jnp.max(cam)) <= 255 and int(jnp.min(cam)) >= 0
  print("KERNEL_OK")
</pallas_src>

<mosaic_0001>
module attributes {stable_mosaic.version = 11 : i64} {
  func.func @cam_fused_kernel(%arg0: memref<16x64xf32, #tpu.memory_space<vmem>>, %arg1: memref<32x16xf32, #tpu.memory_space<vmem>>, %arg2: memref<8x32xf32, #tpu.memory_space<vmem>>, %arg3: memref<8x1xf32, #tpu.memory_space<vmem>>, %arg4: memref<64x256xf32, #tpu.memory_space<vmem>>, %arg5: memref<1x256xi8, #tpu.memory_space<vmem>>) attributes {dimension_semantics = [], scalar_prefetch = 0 : i64, scratch_operands = 0 : i64, tpu.core_type = #tpu.core_type<tc>} {
    %c0 = arith.constant 0 : index
    %c0_0 = arith.constant 0 : index
    %0 = vector.load %arg1[%c0, %c0_0] : memref<32x16xf32, #tpu.memory_space<vmem>>, vector<32x16xf32>
    %c0_1 = arith.constant 0 : index
    %c0_2 = arith.constant 0 : index
    %1 = vector.load %arg0[%c0_1, %c0_2] : memref<16x64xf32, #tpu.memory_space<vmem>>, vector<16x64xf32>
    %cst = arith.constant dense<0.000000e+00> : vector<32x64xf32>
    %2 = tpu.matmul %0, %1, %cst {dimension_numbers = #tpu.dot_dimension_numbers<[1], [0], [0], [1], [0, 0, 1, 1], [], []>} : vector<32x16xf32>, vector<16x64xf32>, vector<32x64xf32> -> vector<32x64xf32>
    %cst_3 = arith.constant 0.000000e+00 : f32
    %3 = vector.broadcast %cst_3 : f32 to vector<32x64xf32>
    %4 = arith.maximumf %2, %3 : vector<32x64xf32>
    %c0_4 = arith.constant 0 : index
    %c0_5 = arith.constant 0 : index
    %5 = vector.load %arg2[%c0_4, %c0_5] : memref<8x32xf32, #tpu.memory_space<vmem>>, vector<8x32xf32>
    %cst_6 = arith.constant dense<0.000000e+00> : vector<8x64xf32>
    %6 = tpu.matmul %5, %4, %cst_6 {dimension_numbers = #tpu.dot_dimension_numbers<[1], [0], [0], [1], [0, 0, 1, 1], [], []>} : vector<8x32xf32>, vector<32x64xf32>, vector<8x64xf32> -> vector<8x64xf32>
    %c0_7 = arith.constant 0 : index
    %c0_8 = arith.constant 0 : index
    %7 = vector.load %arg4[%c0_7, %c0_8] : memref<64x256xf32, #tpu.memory_space<vmem>>, vector<64x256xf32>
    %cst_9 = arith.constant dense<0.000000e+00> : vector<8x256xf32>
    %8 = tpu.matmul %6, %7, %cst_9 {dimension_numbers = #tpu.dot_dimension_numbers<[1], [0], [0], [1], [0, 0, 1, 1], [], []>} : vector<8x64xf32>, vector<64x256xf32>, vector<8x256xf32> -> vector<8x256xf32>
    %cst_10 = arith.constant dense<0.000000e+00> : vector<8xf32>
    %9 = vector.multi_reduction <add>, %6, %cst_10 [1] : vector<8x64xf32> to vector<8xf32>
    %10 = vector.shape_cast %9 : vector<8xf32> to vector<8x1xf32>
    %cst_11 = arith.constant 6.400000e+01 : f32
    %11 = vector.broadcast %cst_11 : f32 to vector<8x1xf32>
    %12 = arith.divf %10, %11 : vector<8x1xf32>
    %c0_12 = arith.constant 0 : index
    %c0_13 = arith.constant 0 : index
    %13 = vector.load %arg3[%c0_12, %c0_13] : memref<8x1xf32, #tpu.memory_space<vmem>>, vector<8x1xf32>
    %14 = arith.addf %12, %13 : vector<8x1xf32>
    %15 = vector.shape_cast %14 : vector<8x1xf32> to vector<1x8x1xf32>
    %cst_14 = arith.constant dense<0xFF800000> : vector<1xf32>
    %16 = vector.multi_reduction <maximumf>, %15, %cst_14 [1, 2] : vector<1x8x1xf32> to vector<1xf32>
    %17 = vector.shape_cast %16 : vector<1xf32> to vector<1x1x1xf32>
    %18 = vector.extract %17[0, 0, 0] : f32 from vector<1x1x1xf32>
    %19 = tpu.iota {dimensions = array<i32: 0>} : vector<8x1xi32>
    %20 = vector.broadcast %18 : f32 to vector<8x1xf32>
    %21 = arith.cmpf oeq, %14, %20 : vector<8x1xf32>
    %c8_i32 = arith.constant 8 : i32
    %22 = vector.broadcast %c8_i32 : i32 to vector<8x1xi32>
    %23 = arith.select %21, %19, %22 : vector<8x1xi1>, vector<8x1xi32>
    %24 = vector.shape_cast %23 : vector<8x1xi32> to vector<1x8x1xi32>
    %cst_15 = arith.constant dense<2147483647> : vector<1xi32>
    %25 = vector.multi_reduction <minsi>, %24, %cst_15 [1, 2] : vector<1x8x1xi32> to vector<1xi32>
    %26 = vector.shape_cast %25 : vector<1xi32> to vector<1x1x1xi32>
    %27 = vector.extract %26[0, 0, 0] : i32 from vector<1x1x1xi32>
    %28 = vector.broadcast %27 : i32 to vector<8x1xi32>
    %29 = arith.cmpi eq, %19, %28 : vector<8x1xi32>
    %30 = arith.extui %29 : vector<8x1xi1> to vector<8x1xi32>
    %31 = arith.sitofp %30 : vector<8x1xi32> to vector<8x1xf32>
    %32 = vector.broadcast %31 : vector<8x1xf32> to vector<8x256xf32>
    %33 = arith.mulf %8, %32 : vector<8x256xf32>
    %cst_16 = arith.constant dense<0.000000e+00> : vector<256xf32>
    %34 = vector.multi_reduction <add>, %33, %cst_16 [0] : vector<8x256xf32> to vector<256xf32>
    %35 = vector.shape_cast %34 : vector<256xf32> to vector<1x256xf32>
    %36 = vector.shape_cast %35 : vector<1x256xf32> to vector<1x1x256xf32>
    %cst_17 = arith.constant dense<0x7F800000> : vector<1xf32>
    %37 = vector.multi_reduction <minimumf>, %36, %cst_17 [1, 2] : vector<1x1x256xf32> to vector<1xf32>
    %38 = vector.shape_cast %37 : vector<1xf32> to vector<1x1x1xf32>
    %39 = vector.extract %38[0, 0, 0] : f32 from vector<1x1x1xf32>
    %40 = vector.broadcast %39 : f32 to vector<1x256xf32>
    %41 = arith.subf %35, %40 : vector<1x256xf32>
    %42 = vector.shape_cast %41 : vector<1x256xf32> to vector<1x1x256xf32>
    %cst_18 = arith.constant dense<0xFF800000> : vector<1xf32>
    %43 = vector.multi_reduction <maximumf>, %42, %cst_18 [1, 2] : vector<1x1x256xf32> to vector<1xf32>
    %44 = vector.shape_cast %43 : vector<1xf32> to vector<1x1x1xf32>
    %45 = vector.extract %44[0, 0, 0] : f32 from vector<1x1x1xf32>
    %46 = vector.broadcast %45 : f32 to vector<1x1xf32>
    %cst_19 = arith.constant 9.99999996E-13 : f32
    %47 = vector.broadcast %cst_19 : f32 to vector<1x1xf32>
    %48 = arith.maximumf %46, %47 : vector<1x1xf32>
    %49 = tpu.reciprocal %48 {approx = true} : vector<1x1xf32> -> vector<1x1xf32>
    %50 = vector.broadcast %49 : vector<1x1xf32> to vector<1x256xf32>
    %51 = arith.mulf %41, %50 : vector<1x256xf32>
    %cst_20 = arith.constant 1.000000e+00 : f32
    %52 = vector.broadcast %cst_20 : f32 to vector<1x256xf32>
    %53 = arith.subf %52, %51 : vector<1x256xf32>
    %cst_21 = arith.constant 2.550000e+02 : f32
    %54 = vector.broadcast %cst_21 : f32 to vector<1x256xf32>
    %55 = arith.mulf %54, %53 : vector<1x256xf32>
    %cst_22 = arith.constant 0.000000e+00 : f32
    %cst_23 = arith.constant 2.550000e+02 : f32
    %56 = vector.broadcast %cst_22 : f32 to vector<1x256xf32>
    %57 = arith.maximumf %56, %55 : vector<1x256xf32>
    %58 = vector.broadcast %cst_23 : f32 to vector<1x256xf32>
    %59 = arith.minimumf %58, %57 : vector<1x256xf32>
    %60 = arith.fptoui %59 : vector<1x256xf32> to vector<1x256xi8>
    %c0_24 = arith.constant 0 : index
    %c0_25 = arith.constant 0 : index
    %61 = vector.load %arg5[%c0_24, %c0_25] : memref<1x256xi8, #tpu.memory_space<vmem>>, vector<1x256xi8>
    tpu.vector_store %arg5[%c0_24, %c0_25], %60 {strides = array<i32>} : memref<1x256xi8, #tpu.memory_space<vmem>>, vector<1x256xi8>,
    return
  }
}

</mosaic_0001>

<bundles_post_ra>
// kernel: visual_computer_forward.1
= control target key start
LH: loop header
LB: loop body
LE: loop exit
PB: predicated region body
PF: predicated region fallthrough
CT: control target
= control target key end

     0   :  { %vm26_vm0 = vcmask 130048   ;;  %v507_v7 = vmov 0.0|0.0   ;;  %vm508_vm1 = vmmov 0   ;;  %v509_v8 = vmov 0.0   ;;  %s629_s0 = inlined_call_operand.vmem [shape: f32[16,64], index: 0, kind: input, shape index: {}]   ;;  %s630_s1 = inlined_call_operand.vmem [shape: f32[32,16], index: 1, kind: input, shape index: {}]   ;;  %s631_s4 = inlined_call_operand.vmem [shape: f32[64,256], index: 4, kind: input, shape index: {}]   ;;  %s632_s2 = inlined_call_operand.vmem [shape: f32[8,32], index: 2, kind: input, shape index: {}]   ;;  %s633_s3 = inlined_call_operand.vmem [shape: f32[8,1], index: 3, kind: input, shape index: {}]   ;;  %s634_s5 = inlined_call_operand.vmem [shape: u8[1,256], index: 5, kind: output, shape index: {}]  }
   0x1   :  { %v24_v0 = vld [vmem:[%s629_s0] sm:$0xff]  ;;  %v25_v1 = vld [vmem:[%s629_s0 + $0x8] sm:$0xff]  ;;  %v22_v5 = vld [vmem:[%s630_s1 + $0x10] sm:$0xff]  ;;  %287 = vmatprep.mubr.f32.mxu0 %v509_v8  ;;  %vm129_vm2 = vcmask 261120   ;;  %vm219_vm3 = vcmask 523264   ;;  %vm301_vm4 = vcmask 7168   ;;  %v312_v61 = vlaneseq }
   0x2   :  { %v20_v2 = vld [vmem:[%s630_s1] sm:$0xff]  ;;  %v467_v3 = vpack.c.bf16 %v25_v1, %v24_v0  ;;  %v21_v4 = vld [vmem:[%s630_s1 + $0x8] sm:$0xff]  ;;  %v23_v6 = vld [vmem:[%s630_s1 + $0x18] sm:$0xff]  ;;  %vm413_vm11 = vcmask 1040384   ;;  %vm414_vm12 = vsmask.f32 0 }
   0x3   :  { %450 = vmatprep.mubr.msk.f32.mxu1 %vm26_vm0, %v20_v2  ;;  %v204_v9 = vld [vmem:[%s631_s4 + $0x8] sm:$0xff]  ;;  %v206_v10 = vld [vmem:[%s631_s4 + $0x18] sm:$0xff]  ;;  %v203_v11 = vld [vmem:[%s631_s4] sm:$0xff]  ;;  %v616_v62 = vshrl.u32 %v312_v61, 7  ;;  %vm416_vm13 = vcmask 1041409  }
   0x4   :  { %468 = vmatprep.subr.bf16.mxu1 %v467_v3  ;;  %v477_v12 = vpack.c.bf16 %v206_v10, %v204_v9  ;;  %v205_v13 = vld [vmem:[%s631_s4 + $0x10] sm:$0xff]  ;;  %v208_v14 = vld [vmem:[%s631_s4 + $0x28] sm:$0xff]  ;;  %v210_v15 = vld [vmem:[%s631_s4 + $0x38] sm:$0xff]  ;;  %vm417_vm14 = vsmask.f32 1024 }
   0x5   :  { %470 = vmatpush3.bf16.msra.mxu1 %v467_v3  ;;  %v479_v16 = vpack.c.bf16 %v205_v13, %v203_v11  ;;  %v481_v17 = vpack.c.bf16 %v210_v15, %v208_v14  ;;  %v207_v18 = vld [vmem:[%s631_s4 + $0x20] sm:$0xff]  ;;  %v209_v19 = vld [vmem:[%s631_s4 + $0x30] sm:$0xff]  ;;  %v212_v20 = vld [vmem:[%s631_s4 + $0x48] sm:$0xff] }
   0x6   :  { %471 = vmatprep.subr.bf16.mxu1 %v507_v7  ;;  %478 = vmatprep.subr.bf16.mxu0 %v477_v12  ;;  %v214_v21 = vld [vmem:[%s631_s4 + $0x58] sm:$0xff]  ;;  %v483_v22 = vpack.c.bf16 %v209_v19, %v207_v18  ;;  %v211_v24 = vld [vmem:[%s631_s4 + $0x40] sm:$0xff]  ;;  %v213_v25 = vld [vmem:[%s631_s4 + $0x50] sm:$0xff] }
   0x7   :  { %480 = vmatpush1.bf16.msra.mxu0 %v479_v16  ;;  %v485_v23 = vpack.c.bf16 %v214_v21, %v212_v20  ;;  %v216_v26 = vld [vmem:[%s631_s4 + $0x68] sm:$0xff]  ;;  %v218_v27 = vld [vmem:[%s631_s4 + $0x78] sm:$0xff]  ;;  %v487_v28 = vpack.c.bf16 %v213_v25, %v211_v24  ;;  %v215_v30 = vld [vmem:[%s631_s4 + $0x60] sm:$0xff] }
   0x8   :  { %451 = vmatmul.mubr.msk.f32.vlgmr.msra.gmra.mrb[0].mxu1 %vm26_vm0, %v21_v4  ;;  %482 = vmatprep.subr.bf16.mxu0 %v481_v17  ;;  %v489_v29 = vpack.c.bf16 %v218_v27, %v216_v26  ;;  %v217_v31 = vld [vmem:[%s631_s4 + $0x70] sm:$0xff]  ;;  %v128_v43 = vld [vmem:[%s632_s2] sm:$0xff]  ;;  %vm415_vm15 = vmand %vm413_vm11, %vm414_vm12 }
   0x9   :  { %453 = vmatprep.mubr.msk.f32.mxu1 %vm26_vm0, %v22_v5  ;;  %v491_v32 = vpack.c.bf16 %v217_v31, %v215_v30  ;;  %v299_v48 = vld [vmem:[%s633_s3] sm:$0xff] }
   0xb   :  { %484 = vmatpush1.bf16.msra.mxu0 %v483_v22 }
   0xc   :  { %454 = vmatmul.mubr.msk.f32.gmra.mrb[2].mxu1 %vm26_vm0, %v23_v6  ;;  %486 = vmatprep.subr.bf16.mxu0 %v485_v23  ;;  %vm418_vm0 = vmand %vm416_vm13, %vm417_vm14 }
   0xd   :  { %464 = vmatprep.mubr.msk.f32.mxu1 %vm508_vm1, %v509_v8  ;;  %vm419_vm1 = vmor %vm418_vm0, %vm415_vm15 }
   0xf   :  { %488 = vmatpush1.bf16.msra.mxu0 %v487_v28 }
  0x10   :  { %490 = vmatprep.subr.bf16.mxu0 %v489_v29 }
  0x13   :  { %492 = vmatpush1.bf16.msra.mxu0 %v491_v32 }
  0xdb   :  { %v452_v33 = vpop.f32.mrb[0].mxu1 }
  0xdc   :  { %v125_v34 = vmax.f32 %v452_v33, 0.0  ;;  %v105_v35 = vpop.f32.mrb[1].mxu1 }
  0xdd   :  { %v124_v36 = vmax.f32 %v105_v35, 0.0 }
  0xdf   :  { %v472_v37 = vpack.c.bf16 %v125_v34, %v124_v36  ;;  %v455_v38 = vpop.f32.mrb[2].mxu1 }
  0xe0   :  { %v127_v39 = vmax.f32 %v455_v38, 0.0  ;;  %v115_v40 = vpop.f32.mrb[3].mxu1 }
  0xe1   :  { %v126_v41 = vmax.f32 %v115_v40, 0.0  ;;  %473 = vmatpush3.bf16.msra.mxu1 %v472_v37 }
  0xe2   :  { %474 = vmatprep.subr.bf16.mxu1 %v507_v7 }
  0xe3   :  { %v475_v42 = vpack.c.bf16 %v127_v39, %v126_v41 }
  0xe5   :  { %476 = vmatpush3.bf16.msra.mxu1 %v475_v42 }
  0xe8   :  { %465 = vmatmul.mubr.msk.f32.vlgmr.msra.gmra.mrb[4].mxu1 %vm129_vm2, %v128_v43 }
 0x1bb   :  { %v199_v44 = vpop.f32.mrb[4].mxu1 }
 0x1bc   :  { %v466_v45 = vpop.f32.mrb[5].mxu1  ;;  %432 = vmatmul.mubr.msk.f32.vlgmr.msra.gmra.mrb[0].mxu0 %vm219_vm3, %v199_v44  ;;  %v294_v46 = vsel %vm219_vm3, %v199_v44, 0.0 }
 0x1bd   :  { %295 = vadd.xlane.f32.xlu0 %v294_v46 }
 0x24a   :  { %v296_v47 = vpop.xlane.xlu0 %295 }
 0x24b   :  { %v298_v49 = vmul.f32 0.015625, %v296_v47 }
 0x24d   :  { %v300_v50 = vadd.f32 %v299_v48, %v298_v49  ;;  %v510_v49 = vmov 1966171168  }
 0x24f   :  { %v302_v51 = vsel %vm301_vm4, %v300_v50, -inf }
 0x250   :  { %303 = vmax.xlane.f32.xlu0 %v302_v51 }
 0x28f   :  { %v289_v52 = vpop.f32.mrb[0].mxu0 }
 0x290   :  { %v291_v53 = vpop.f32.mrb[1].mxu0 }
 0x2dd   :  { %v304_v54 = vpop.xlane.xlu0 %303 }
 0x2de   :  { %v305_v55 = vrot.slane %v304_v54, 4 }
 0x2e0   :  { %v306_v56 = vmax.f32 %v304_v54, %v305_v55 }
 0x2e2   :  { %v307_v57 = vrot.slane %v306_v56, 2 }
 0x2e4   :  { %v308_v58 = vmax.f32 %v306_v56, %v307_v57 }
 0x2e6   :  { %v309_v59 = vrot.slane %v308_v58, 1 }
 0x2e8   :  { %v310_v60 = vmax.f32 %v308_v58, %v309_v59 }
 0x2ea   :  { %493 = vpush %v310_v60 }
 0x31b   :  { %s494_s2 = spop %493 }
 0x31c   :  { %v314_v63 = vstv %s494_s2 }
 0x31d   :  { %vm315_vm5 = vcmp.eq.f32.partialorder %v300_v50, %v314_v63  ;;  %v400_v50 = vunpack.c.l.s4 %v510_v49 }
 0x31e   :  { %v316_v0 = vsel %vm315_vm5, %v616_v62, 8 }
 0x31f   :  { %v317_v1 = vsel %vm301_vm4, %v316_v0, 2147483647  ;;  %v401_v55 = vunpack.c.0.s8 %v400_v50 }
 0x320   :  { %v319_v2 = vshra.s32 %v317_v1, 16  ;;  %v318_v4 = vand.u32 65535, %v317_v1 }
 0x321   :  { %v404_v60 = vsub.s32 %v401_v55, %v616_v62 }
 0x322   :  { %v321_v3 = vcvt.s32.f32 %v319_v2  ;;  %v320_v6 = vcvt.s32.f32 %v318_v4  ;;  %v420_v2 = vld [vmem:[%s634_s5] sm:$0x3] }
 0x324   :  { %322 = vmin.xlane.f32.xlu1 %v321_v3 }
 0x3b1   :  { %v323_v5 = vpop.xlane.xlu1 %322 }
 0x3b2   :  { %vm324_vm6 = vcmp.eq.f32.partialorder %v321_v3, %v323_v5  ;;  %v329_v9 = vcvt.f32.s32 %v323_v5 }
 0x3b3   :  { %v325_v7 = vsel %vm324_vm6, %v320_v6, inf }
 0x3b4   :  { %326 = vmin.xlane.f32.xlu1 %v325_v7  ;;  %v330_v11 = vshll.u32 %v329_v9, 16 }
 0x441   :  { %v327_v10 = vpop.xlane.xlu1 %326 }
 0x442   :  { %v328_v12 = vcvt.f32.s32 %v327_v10 }
 0x444   :  { %v331_v13 = vadd.s32 %v330_v11, %v328_v12 }
 0x446   :  { %v332_v14 = vrot.slane %v331_v13, 4 }
 0x448   :  { %vm333_vm7 = vcmp.lt.s32.totalorder %v331_v13, %v332_v14 }
 0x449   :  { %v334_v15 = vsel %vm333_vm7, %v331_v13, %v332_v14 }
 0x44a   :  { %v335_v16 = vrot.slane %v334_v15, 2 }
 0x44c   :  { %vm336_vm8 = vcmp.lt.s32.totalorder %v334_v15, %v335_v16 }
 0x44d   :  { %v337_v17 = vsel %vm336_vm8, %v334_v15, %v335_v16 }
 0x44e   :  { %v338_v18 = vrot.slane %v337_v17, 1 }
 0x450   :  { %vm339_vm9 = vcmp.lt.s32.totalorder %v337_v17, %v338_v18 }
 0x451   :  { %v340_v19 = vsel %vm339_vm9, %v337_v17, %v338_v18 }
 0x452   :  { %495 = vpush %v340_v19 }
 0x483   :  { %s496_s3 = spop %495 }
 0x484   :  { %v342_v20 = vstv %s496_s3 }
 0x485   :  { %vm343_vm10 = vcmp.eq.s32.totalorder %v616_v62, %v342_v20 }
 0x486   :  { %v433_v21 = vsel %vm343_vm10, 1.0, %v509_v8 }
 0x487   :  { %v346_v22 = vmul.f32 %v433_v21, %v289_v52  ;;  %v347_v23 = vmul.f32 %v433_v21, %v291_v53 }
 0x489   :  { %v348_v24 = vrot.slane %v346_v22, 4  ;;  %v354_v25 = vrot.slane %v347_v23, 4 }
 0x48b   :  { %v349_v26 = vadd.f32 %v348_v24, %v346_v22  ;;  %v355_v27 = vadd.f32 %v354_v25, %v347_v23 }
 0x48d   :  { %v350_v28 = vrot.slane %v349_v26, 2  ;;  %v356_v29 = vrot.slane %v355_v27, 2 }
 0x48f   :  { %v351_v30 = vadd.f32 %v350_v28, %v349_v26  ;;  %v357_v31 = vadd.f32 %v356_v29, %v355_v27 }
 0x491   :  { %v352_v32 = vrot.slane %v351_v30, 1  ;;  %v358_v33 = vrot.slane %v357_v31, 1 }
 0x493   :  { %v353_v34 = vadd.f32 %v352_v32, %v351_v30  ;;  %v359_v35 = vadd.f32 %v358_v33, %v357_v31 }
 0x495   :  { %v360_v36 = vmin.f32 %v353_v34, %v359_v35 }
 0x497   :  { %361 = vmin.xlane.f32.xlu0 %v360_v36 }
 0x524   :  { %v362_v37 = vpop.xlane.xlu0 %361 }
 0x525   :  { %497 = vpush %v362_v37 }
 0x556   :  { %s498_s11 = spop %497 }
 0x557   :  { %v364_v8 = vstv %s498_s11 }
 0x558   :  { %v365_v38 = vsub.f32 %v353_v34, %v364_v8  ;;  %v366_v39 = vsub.f32 %v359_v35, %v364_v8 }
 0x55a   :  { %v367_v40 = vmax.f32 %v365_v38, %v366_v39 }
 0x55c   :  { %368 = vmax.xlane.f32.xlu1 %v367_v40 }
 0x5e9   :  { %v369_v41 = vpop.xlane.xlu1 %368 }
 0x5ea   :  { %499 = vpush %v369_v41 }
 0x61b   :  { %s500_s12 = spop %499 }
 0x61c   :  { %v371_v42 = vstv %s500_s12 }
 0x61d   :  { %v372_v43 = vmax.f32 %v371_v42, 1e-12 }
 0x61f   :  { %505 = vrcp.f32 %v372_v43 }
 0x629   :  { %v506_v44 = vpop.eup %505 }
 0x62a   :  { %v374_v45 = vmul.f32 %v506_v44, %v365_v38  ;;  %v375_v46 = vmul.f32 %v506_v44, %v366_v39 }
 0x62c   :  { %v376_v47 = vsub.f32 1.0, %v374_v45  ;;  %v377_v48 = vsub.f32 1.0, %v375_v46 }
 0x62e   :  { %v378_v51 = vmul.f32 255.0, %v376_v47  ;;  %v379_v52 = vmul.f32 255.0, %v377_v48 }
 0x630   :  { %v380_v53 = vmax.f32 %v378_v51, 0.0  ;;  %v381_v54 = vmax.f32 %v379_v52, 0.0 }
 0x632   :  { %v382_v56 = vmin.f32 %v380_v53, 255.0  ;;  %v383_v57 = vmin.f32 %v381_v54, 255.0 }
 0x634   :  { %v384_v58 = vtrunc.f32 %v382_v56  ;;  %v385_v59 = vtrunc.f32 %v383_v57 }
 0x636   :  { %v386_v61 = vpack.c.f32.eXmY %v384_v58, %v384_v58, 56  ;;  %v392_v63 = vpack.c.f32.eXmY %v385_v59, %v385_v59, 56 }
 0x638   :  { %v434_v0 = vpack.c.b8 %v392_v63, %v386_v61 }
 0x63a   :  { %v405_v1 = vrot.slane %v434_v0, %v404_v60 }
 0x63c   :  { %v412_v3 = vrot.slane %v405_v1, %v404_v60 }
 0x63e   :  { %v421_v4 = vsel %vm419_vm1, %v412_v3, %v420_v2 }
 0x63f   :  { %422 = vst [vmem:[%s634_s5] sm:$0x3] %v421_v4 }

</bundles_post_ra>
